<compile_context>
chip_gen: v7x
topology: tpu7x:2x2x1
jax: 0.10.0
libtpu: 0.0.40
codegen_flags: <defaults>
</compile_context>

<pallas_src>
import functools

import jax
import jax.numpy as jnp
from jax.experimental import pallas as pl
from jax.experimental.pallas import tpu as pltpu


def _round_up(n, m):
    return ((n + m - 1) // m) * m


def _nice_coupling_kernel(x1_ref, x2_ref,
                          w1f_ref, b1f_ref, w2f_ref, b2f_ref,
                          w1g_ref, b1g_ref, w2g_ref, b2g_ref,
                          y1_ref, y2_ref, *, mm_dtype):
    """One batch tile of the coupling block (two 2-layer MLP subnets)."""
    # Elementwise work stays in f32; only the MXU inputs are (optionally) bf16.
    x1 = x1_ref[...].astype(jnp.float32)
    x2 = x2_ref[...].astype(jnp.float32)

    # y1 = x1 + F(x2),  F = Linear -> ReLU -> Linear
    h_f = jnp.maximum(
        jnp.dot(x2.astype(mm_dtype), w1f_ref[...],
                preferred_element_type=jnp.float32) + b1f_ref[...], 0.0)
    f_out = jnp.dot(h_f.astype(mm_dtype), w2f_ref[...],
                    preferred_element_type=jnp.float32) + b2f_ref[...]
    y1 = x1 + f_out

    # y2 = x2 + G(y1),  G = Linear -> ReLU -> Linear
    h_g = jnp.maximum(
        jnp.dot(y1.astype(mm_dtype), w1g_ref[...],
                preferred_element_type=jnp.float32) + b1g_ref[...], 0.0)
    g_out = jnp.dot(h_g.astype(mm_dtype), w2g_ref[...],
                    preferred_element_type=jnp.float32) + b2g_ref[...]
    y2 = x2 + g_out

    # Single dtype cast at the store (lane-dense, full-width outputs).
    y1_ref[...] = y1.astype(y1_ref.dtype)
    y2_ref[...] = y2.astype(y2_ref.dtype)


def nice_coupling_forward(x, params, *, block_batch=256,
                          matmul_dtype=jnp.float32):
    """Forward (rev=False, unconditional) NICE coupling block via Pallas.

    x: (batch, channels).  params: dict from make_params().
    matmul_dtype: dtype fed to the MXU (jnp.bfloat16 recommended on v6e/v7x);
    accumulation and all elementwise math stay in f32.
    """
    # TODO(synk): rev=True inverse path and conditional inputs (dims_c) are not
    # implemented; only the default forward (rev=False, c=[]) is covered.
    batch, channels = x.shape
    split1 = channels // 2
    split2 = channels - split1
    hidden = params["w1f"].shape[1]

    # Split along channels in the wrapper (free layout plumbing) so every
    # kernel operand is lane-dense with its full last dim.
    x1 = x[:, :split1]
    x2 = x[:, split1:]

    # Batch tile: multiple of 8 sublanes, capped so that (2 inputs + 2 outputs)
    # x double-buffered tiles + resident weights stay far below even v7x's
    # 64 MiB VMEM.
    tb = min(block_batch, _round_up(batch, 8))
    tb = max(8, (tb // 8) * 8)
    batch_pad = _round_up(batch, tb)
    if batch_pad != batch:
        pad = ((0, batch_pad - batch), (0, 0))
        x1 = jnp.pad(x1, pad)
        x2 = jnp.pad(x2, pad)
    grid = (batch_pad // tb,)

    # Weights fed to the MXU in matmul_dtype (halves weight traffic for bf16);
    # biases stay f32 because the bias add is VPU work.
    w1f = params["w1f"].astype(matmul_dtype)
    w2f = params["w2f"].astype(matmul_dtype)
    w1g = params["w1g"].astype(matmul_dtype)
    w2g = params["w2g"].astype(matmul_dtype)
    b1f = params["b1f"].astype(jnp.float32)
    b2f = params["b2f"].astype(jnp.float32)
    b1g = params["b1g"].astype(jnp.float32)
    b2g = params["b2g"].astype(jnp.float32)

    def batch_spec(cols):
        return pl.BlockSpec((tb, cols), lambda i: (i, 0))

    def resident_spec(arr):
        # Full-array block, constant index_map -> loaded once, stays in VMEM.
        ndim = arr.ndim
        return pl.BlockSpec(arr.shape, lambda i, _nd=ndim: (0,) * _nd)

    in_specs = [
        batch_spec(split1),            # x1
        batch_spec(split2),            # x2
        resident_spec(w1f), resident_spec(b1f),
        resident_spec(w2f), resident_spec(b2f),
        resident_spec(w1g), resident_spec(b1g),
        resident_spec(w2g), resident_spec(b2g),
    ]
    out_specs = (batch_spec(split1), batch_spec(split2))
    out_shape = (jax.ShapeDtypeStruct((batch_pad, split1), x.dtype),
                 jax.ShapeDtypeStruct((batch_pad, split2), x.dtype))

    # Advisory cost estimate: 4 GEMMs + epilogue.
    flops = 2 * batch_pad * (split2 * hidden + hidden * split1 +
                             split1 * hidden + hidden * split2)
    weight_bytes = sum(int(a.size) * a.dtype.itemsize
                       for a in (w1f, b1f, w2f, b2f, w1g, b1g, w2g, b2g))
    bytes_accessed = (2 * batch_pad * channels * x.dtype.itemsize
                      + weight_bytes)
    cost = pl.CostEstimate(flops=flops, transcendentals=0,
                           bytes_accessed=bytes_accessed)

    kernel = functools.partial(_nice_coupling_kernel, mm_dtype=matmul_dtype)

    y1, y2 = pl.pallas_call(
        kernel,
        out_shape=out_shape,
        grid=grid,
        in_specs=in_specs,
        out_specs=out_specs,
        compiler_params=pltpu.CompilerParams(
            dimension_semantics=("parallel",)),
        cost_estimate=cost,
    )(x1, x2, w1f, b1f, w2f, b2f, w1g, b1g, w2g, b2g)

    # Re-join the two halves in the wrapper and drop batch padding.
    return jnp.concatenate([y1, y2], axis=1)[:batch]


def make_params(key, channels, hidden):
    """Deterministic synthetic parameters for the two subnets F and G."""
    split1 = channels // 2
    split2 = channels - split1
    ks = jax.random.split(key, 8)

    def lin(kw, fan_in, fan_out):
        scale = 1.0 / jnp.sqrt(fan_in)
        return jax.random.uniform(kw, (fan_in, fan_out), jnp.float32,
                                  -scale, scale)

    # F: split2 -> hidden -> split1 ;  G: split1 -> hidden -> split2
    return {
        "w1f": lin(ks[0], split2, hidden),
        "b1f": jax.random.uniform(ks[1], (1, hidden), jnp.float32, -0.1, 0.1),
        "w2f": lin(ks[2], hidden, split1),
        "b2f": jax.random.uniform(ks[3], (1, split1), jnp.float32, -0.1, 0.1),
        "w1g": lin(ks[4], split1, hidden),
        "b1g": jax.random.uniform(ks[5], (1, hidden), jnp.float32, -0.1, 0.1),
        "w2g": lin(ks[6], hidden, split2),
        "b2g": jax.random.uniform(ks[7], (1, split2), jnp.float32, -0.1, 0.1),
    }


def reference_forward(x, p, matmul_dtype=jnp.float32):
    """Pure-JAX reference matching the PyTorch forward (rev=False).

    Mirrors the kernel's mixed precision: dot inputs in matmul_dtype,
    f32 accumulation, f32 elementwise epilogue.
    """
    channels = x.shape[1]
    s1 = channels // 2
    x1 = x[:, :s1].astype(jnp.float32)
    x2 = x[:, s1:].astype(jnp.float32)

    def mlp(inp, w1, b1, w2, b2):
        h = jnp.maximum(
            jnp.dot(inp.astype(matmul_dtype), w1.astype(matmul_dtype),
                    preferred_element_type=jnp.float32) + b1, 0.0)
        return jnp.dot(h.astype(matmul_dtype), w2.astype(matmul_dtype),
                       preferred_element_type=jnp.float32) + b2

    y1 = x1 + mlp(x2, p["w1f"], p["b1f"], p["w2f"], p["b2f"])
    y2 = x2 + mlp(y1, p["w1g"], p["b1g"], p["w2g"], p["b2g"])
    return jnp.concatenate([y1, y2], axis=1).astype(x.dtype)


if __name__ == "__main__":
    batch, channels, hidden = 256, 16, 32

    key = jax.random.PRNGKey(0)
    kx, kp = jax.random.split(key)
    x = jax.random.normal(kx, (batch, channels), jnp.float32)
    params = make_params(kp, channels, hidden)

    # f32 path (exact vs reference).
    out_f32 = nice_coupling_forward(x, params, block_batch=128,
                                    matmul_dtype=jnp.float32)
    out_f32 = jax.block_until_ready(out_f32)
    ref_f32 = reference_forward(x, params, matmul_dtype=jnp.float32)
    assert out_f32.shape == (batch, channels)
    assert jnp.allclose(out_f32, ref_f32, atol=1e-5, rtol=1e-5), \
        "f32 mismatch vs reference"

    # bf16-MXU path (v6e/v7x perf recommendation) vs a reference that rounds
    # the dot inputs identically; only f32 accumulation order differs.
    out_bf16 = nice_coupling_forward(x, params, block_batch=128,
                                     matmul_dtype=jnp.bfloat16)
    out_bf16 = jax.block_until_ready(out_bf16)
    ref_bf16 = reference_forward(x, params, matmul_dtype=jnp.bfloat16)
    assert jnp.allclose(out_bf16, ref_bf16, atol=2e-3, rtol=2e-3), \
        "bf16 mismatch vs reference"

    print("KERNEL_OK")
</pallas_src>

<mosaic_0001>
module attributes {stable_mosaic.version = 11 : i64} {
  func.func @_nice_coupling_kernel(%arg0: i32, %arg1: memref<128x8xf32, #tpu.memory_space<vmem>>, %arg2: memref<128x8xf32, #tpu.memory_space<vmem>>, %arg3: memref<8x32xf32, #tpu.memory_space<vmem>>, %arg4: memref<1x32xf32, #tpu.memory_space<vmem>>, %arg5: memref<32x8xf32, #tpu.memory_space<vmem>>, %arg6: memref<1x8xf32, #tpu.memory_space<vmem>>, %arg7: memref<8x32xf32, #tpu.memory_space<vmem>>, %arg8: memref<1x32xf32, #tpu.memory_space<vmem>>, %arg9: memref<32x8xf32, #tpu.memory_space<vmem>>, %arg10: memref<1x8xf32, #tpu.memory_space<vmem>>, %arg11: memref<128x8xf32, #tpu.memory_space<vmem>>, %arg12: memref<128x8xf32, #tpu.memory_space<vmem>>) attributes {dimension_semantics = [#tpu.dimension_semantics<parallel>], iteration_bounds = array<i64: 2>, scalar_prefetch = 0 : i64, scratch_operands = 0 : i64, tpu.core_type = #tpu.core_type<tc>, window_params = [{transform_indices = @transform_0, window_bounds = array<i64: 128, 8>}, {transform_indices = @transform_1, window_bounds = array<i64: 128, 8>}, {pipeline_mode = #tpu.pipeline_mode<synchronous>, transform_indices = @transform_2, window_bounds = array<i64: 8, 32>}, {pipeline_mode = #tpu.pipeline_mode<synchronous>, transform_indices = @transform_3, window_bounds = array<i64: 1, 32>}, {pipeline_mode = #tpu.pipeline_mode<synchronous>, transform_indices = @transform_4, window_bounds = array<i64: 32, 8>}, {pipeline_mode = #tpu.pipeline_mode<synchronous>, transform_indices = @transform_5, window_bounds = array<i64: 1, 8>}, {pipeline_mode = #tpu.pipeline_mode<synchronous>, transform_indices = @transform_6, window_bounds = array<i64: 8, 32>}, {pipeline_mode = #tpu.pipeline_mode<synchronous>, transform_indices = @transform_7, window_bounds = array<i64: 1, 32>}, {pipeline_mode = #tpu.pipeline_mode<synchronous>, transform_indices = @transform_8, window_bounds = array<i64: 32, 8>}, {pipeline_mode = #tpu.pipeline_mode<synchronous>, transform_indices = @transform_9, window_bounds = array<i64: 1, 8>}, {transform_indices = @transform_10, window_bounds = array<i64: 128, 8>}, {transform_indices = @transform_11, window_bounds = array<i64: 128, 8>}]} {
    %c0 = arith.constant 0 : index
    %c0_0 = arith.constant 0 : index
    %0 = vector.load %arg1[%c0, %c0_0] : memref<128x8xf32, #tpu.memory_space<vmem>>, vector<128x8xf32>
    %c0_1 = arith.constant 0 : index
    %c0_2 = arith.constant 0 : index
    %1 = vector.load %arg2[%c0_1, %c0_2] : memref<128x8xf32, #tpu.memory_space<vmem>>, vector<128x8xf32>
    %c0_3 = arith.constant 0 : index
    %c0_4 = arith.constant 0 : index
    %2 = vector.load %arg3[%c0_3, %c0_4] : memref<8x32xf32, #tpu.memory_space<vmem>>, vector<8x32xf32>
    %cst = arith.constant dense<0.000000e+00> : vector<128x32xf32>
    %3 = tpu.matmul %1, %2, %cst {dimension_numbers = #tpu.dot_dimension_numbers<[1], [0], [0], [1], [0, 0, 1, 1], [], []>} : vector<128x8xf32>, vector<8x32xf32>, vector<128x32xf32> -> vector<128x32xf32>
    %c0_5 = arith.constant 0 : index
    %c0_6 = arith.constant 0 : index
    %4 = vector.load %arg4[%c0_5, %c0_6] : memref<1x32xf32, #tpu.memory_space<vmem>>, vector<1x32xf32>
    %5 = vector.broadcast %4 : vector<1x32xf32> to vector<128x32xf32>
    %6 = arith.addf %3, %5 : vector<128x32xf32>
    %cst_7 = arith.constant 0.000000e+00 : f32
    %7 = vector.broadcast %cst_7 : f32 to vector<128x32xf32>
    %8 = arith.maximumf %6, %7 : vector<128x32xf32>
    %c0_8 = arith.constant 0 : index
    %c0_9 = arith.constant 0 : index
    %9 = vector.load %arg5[%c0_8, %c0_9] : memref<32x8xf32, #tpu.memory_space<vmem>>, vector<32x8xf32>
    %cst_10 = arith.constant dense<0.000000e+00> : vector<128x8xf32>
    %10 = tpu.matmul %8, %9, %cst_10 {dimension_numbers = #tpu.dot_dimension_numbers<[1], [0], [0], [1], [0, 0, 1, 1], [], []>} : vector<128x32xf32>, vector<32x8xf32>, vector<128x8xf32> -> vector<128x8xf32>
    %c0_11 = arith.constant 0 : index
    %c0_12 = arith.constant 0 : index
    %11 = vector.load %arg6[%c0_11, %c0_12] : memref<1x8xf32, #tpu.memory_space<vmem>>, vector<1x8xf32>
    %12 = vector.broadcast %11 : vector<1x8xf32> to vector<128x8xf32>
    %13 = arith.addf %10, %12 : vector<128x8xf32>
    %14 = arith.addf %0, %13 : vector<128x8xf32>
    %c0_13 = arith.constant 0 : index
    %c0_14 = arith.constant 0 : index
    %15 = vector.load %arg7[%c0_13, %c0_14] : memref<8x32xf32, #tpu.memory_space<vmem>>, vector<8x32xf32>
    %cst_15 = arith.constant dense<0.000000e+00> : vector<128x32xf32>
    %16 = tpu.matmul %14, %15, %cst_15 {dimension_numbers = #tpu.dot_dimension_numbers<[1], [0], [0], [1], [0, 0, 1, 1], [], []>} : vector<128x8xf32>, vector<8x32xf32>, vector<128x32xf32> -> vector<128x32xf32>
    %c0_16 = arith.constant 0 : index
    %c0_17 = arith.constant 0 : index
    %17 = vector.load %arg8[%c0_16, %c0_17] : memref<1x32xf32, #tpu.memory_space<vmem>>, vector<1x32xf32>
    %18 = vector.broadcast %17 : vector<1x32xf32> to vector<128x32xf32>
    %19 = arith.addf %16, %18 : vector<128x32xf32>
    %cst_18 = arith.constant 0.000000e+00 : f32
    %20 = vector.broadcast %cst_18 : f32 to vector<128x32xf32>
    %21 = arith.maximumf %19, %20 : vector<128x32xf32>
    %c0_19 = arith.constant 0 : index
    %c0_20 = arith.constant 0 : index
    %22 = vector.load %arg9[%c0_19, %c0_20] : memref<32x8xf32, #tpu.memory_space<vmem>>, vector<32x8xf32>
    %cst_21 = arith.constant dense<0.000000e+00> : vector<128x8xf32>
    %23 = tpu.matmul %21, %22, %cst_21 {dimension_numbers = #tpu.dot_dimension_numbers<[1], [0], [0], [1], [0, 0, 1, 1], [], []>} : vector<128x32xf32>, vector<32x8xf32>, vector<128x8xf32> -> vector<128x8xf32>
    %c0_22 = arith.constant 0 : index
    %c0_23 = arith.constant 0 : index
    %24 = vector.load %arg10[%c0_22, %c0_23] : memref<1x8xf32, #tpu.memory_space<vmem>>, vector<1x8xf32>
    %25 = vector.broadcast %24 : vector<1x8xf32> to vector<128x8xf32>
    %26 = arith.addf %23, %25 : vector<128x8xf32>
    %27 = arith.addf %1, %26 : vector<128x8xf32>
    %c0_24 = arith.constant 0 : index
    %c0_25 = arith.constant 0 : index
    %28 = vector.load %arg11[%c0_24, %c0_25] : memref<128x8xf32, #tpu.memory_space<vmem>>, vector<128x8xf32>
    tpu.vector_store %arg11[%c0_24, %c0_25], %14 {strides = array<i32>} : memref<128x8xf32, #tpu.memory_space<vmem>>, vector<128x8xf32>,
    %c0_26 = arith.constant 0 : index
    %c0_27 = arith.constant 0 : index
    %29 = vector.load %arg12[%c0_26, %c0_27] : memref<128x8xf32, #tpu.memory_space<vmem>>, vector<128x8xf32>
    tpu.vector_store %arg12[%c0_26, %c0_27], %27 {strides = array<i32>} : memref<128x8xf32, #tpu.memory_space<vmem>>, vector<128x8xf32>,
    return
  }
  func.func @transform_0(%arg0: i32) -> (i32, i32) {
    %c0_i32 = arith.constant 0 : i32
    %c0_i32_0 = arith.constant 0 : i32
    return %arg0, %c0_i32 : i32, i32
  }
  func.func @transform_1(%arg0: i32) -> (i32, i32) {
    %c0_i32 = arith.constant 0 : i32
    %c0_i32_0 = arith.constant 0 : i32
    return %arg0, %c0_i32 : i32, i32
  }
  func.func @transform_2(%arg0: i32) -> (i32, i32) {
    %c0_i32 = arith.constant 0 : i32
    %c0_i32_0 = arith.constant 0 : i32
    %c0_i32_1 = arith.constant 0 : i32
    return %c0_i32, %c0_i32_0 : i32, i32
  }
  func.func @transform_3(%arg0: i32) -> (i32, i32) {
    %c0_i32 = arith.constant 0 : i32
    %c0_i32_0 = arith.constant 0 : i32
    %c0_i32_1 = arith.constant 0 : i32
    return %c0_i32, %c0_i32_0 : i32, i32
  }
  func.func @transform_4(%arg0: i32) -> (i32, i32) {
    %c0_i32 = arith.constant 0 : i32
    %c0_i32_0 = arith.constant 0 : i32
    %c0_i32_1 = arith.constant 0 : i32
    return %c0_i32, %c0_i32_0 : i32, i32
  }
  func.func @transform_5(%arg0: i32) -> (i32, i32) {
    %c0_i32 = arith.constant 0 : i32
    %c0_i32_0 = arith.constant 0 : i32
    %c0_i32_1 = arith.constant 0 : i32
    return %c0_i32, %c0_i32_0 : i32, i32
  }
  func.func @transform_6(%arg0: i32) -> (i32, i32) {
    %c0_i32 = arith.constant 0 : i32
    %c0_i32_0 = arith.constant 0 : i32
    %c0_i32_1 = arith.constant 0 : i32
    return %c0_i32, %c0_i32_0 : i32, i32
  }
  func.func @transform_7(%arg0: i32) -> (i32, i32) {
    %c0_i32 = arith.constant 0 : i32
    %c0_i32_0 = arith.constant 0 : i32
    %c0_i32_1 = arith.constant 0 : i32
    return %c0_i32, %c0_i32_0 : i32, i32
  }
  func.func @transform_8(%arg0: i32) -> (i32, i32) {
    %c0_i32 = arith.constant 0 : i32
    %c0_i32_0 = arith.constant 0 : i32
    %c0_i32_1 = arith.constant 0 : i32
    return %c0_i32, %c0_i32_0 : i32, i32
  }
  func.func @transform_9(%arg0: i32) -> (i32, i32) {
    %c0_i32 = arith.constant 0 : i32
    %c0_i32_0 = arith.constant 0 : i32
    %c0_i32_1 = arith.constant 0 : i32
    return %c0_i32, %c0_i32_0 : i32, i32
  }
  func.func @transform_10(%arg0: i32) -> (i32, i32) {
    %c0_i32 = arith.constant 0 : i32
    %c0_i32_0 = arith.constant 0 : i32
    return %arg0, %c0_i32 : i32, i32
  }
  func.func @transform_11(%arg0: i32) -> (i32, i32) {
    %c0_i32 = arith.constant 0 : i32
    %c0_i32_0 = arith.constant 0 : i32
    return %arg0, %c0_i32 : i32, i32
  }
}

</mosaic_0001>

<bundles_post_ra>
// kernel: tpu_custom_call.1
= control target key start
LH: loop header
LB: loop body
LE: loop exit
PB: predicated region body
PF: predicated region fallthrough
CT: control target
= control target key end

     0   :  { %s1833_s17 = smov 0   ;;  %s2154_s0 = inlined_call_operand.vmem [shape: f32[256,8], index: 0, kind: input, shape index: {}]   ;;  %s2155_s1 = inlined_call_operand.vmem [shape: f32[256,8], index: 1, kind: input, shape index: {}]   ;;  %s2156_s2 = inlined_call_operand.vmem [shape: f32[8,32], index: 2, kind: input, shape index: {}]   ;;  %s2157_s3 = inlined_call_operand.vmem [shape: f32[1,32], index: 3, kind: input, shape index: {}]   ;;  %s2158_s4 = inlined_call_operand.vmem [shape: f32[32,8], index: 4, kind: input, shape index: {}]   ;;  %s2159_s5 = inlined_call_operand.vmem [shape: f32[1,8], index: 5, kind: input, shape index: {}]   ;;  %s2160_s6 = inlined_call_operand.vmem [shape: f32[8,32], index: 6, kind: input, shape index: {}]   ;;  %s2161_s7 = inlined_call_operand.vmem [shape: f32[1,32], index: 7, kind: input, shape index: {}]   ;;  %s2162_s8 = inlined_call_operand.vmem [shape: f32[32,8], index: 8, kind: input, shape index: {}]   ;;  %s2163_s9 = inlined_call_operand.vmem [shape: f32[1,8], index: 9, kind: input, shape index: {}]   ;;  %s2164_s10 = inlined_call_operand.vmem [shape: f32[256,8], index: 10, kind: output, shape index: {0}]   ;;  %s2165_s11 = inlined_call_operand.vmem [shape: f32[256,8], index: 11, kind: output, shape index: {1}]  }
   0x1 LB: > { %s1468_s18 = sadd.s32 4294967295, %s1771_s17   ;;  %p1472_p0 = scmp.ge.s32.totalorder %s1771_s17, 1  ;;  %s1771_s17 = sphi %s1833_s17, %s22_s17  }
   0x2   : > { %p352_p1 = scmp.lt.s32.totalorder %s1771_s17, 3 }
   0x4   : > { %p353_p2 = pnand %p1472_p0, %p352_p1 }
   0x5   : > { %v458_v0 = vld [vmem:[%s2156_s2] sm:$0xff] (!%p353_p2)  ;;  %s1473_s21 = sshll.u32 (!%p353_p2), %s1468_s18, 4  ;;  %v677_v2 = vld [vmem:[%s2158_s4 + $0x8] sm:$0xff] (!%p353_p2)  ;;  %vm466_vm0 = vcmask (!%p353_p2), 64512   ;;  %v678_v20 = vld [vmem:[%s2158_s4 + $0x10] sm:$0xff] (!%p353_p2)  ;;  %vm687_vm1 = vcmask (!%p353_p2), 261120  }
   0x6   : > { %356 = sbr.rel (%p353_p2) target bundleno = 918 (0x396), region = 60  ;;  %v676_v1 = vld [vmem:[%s2158_s4] sm:$0xff] (!%p353_p2)  ;;  %1625 = vmatprep.subr.mxu0 (!%p353_p2), %v458_v0  ;;  %p403_p3 = scmp.lt.s32.totalorder (!%p353_p2), %s1473_s21, 31  ;;  %v679_v21 = vld [vmem:[%s2158_s4 + $0x18] sm:$0xff] (!%p353_p2) }
   0x7   : > { %v1741_v3 = vpack.c.bf16 (!%p353_p2), %v677_v2, %v676_v1  ;;  %1626 = vmatpush3.msra.mxu0 (!%p353_p2), %v458_v0  ;;  %v1745_v22 = vpack.c.bf16 (!%p353_p2), %v679_v21, %v678_v20  ;;  %v897_v23 = vld [vmem:[%s2160_s6] sm:$0xff] (!%p353_p2) }
   0x8   : > { %1683 = vmatprep.subr.mxu0 (!%p353_p2), %v897_v23  ;;  %v1481_v24 = vld [vmem:[%s2157_s3] ss:$0 sm:$0xff] (!%p353_p2) }
   0x9   : > { %1742 = vmatprep.subr.bf16.mxu1 (!%p353_p2), %v1741_v3 }
   0xa   : > { %1744 = vmatpush3.bf16.msra.mxu1 (!%p353_p2), %v1741_v3 }
   0xb   : > { %1746 = vmatprep.subr.bf16.mxu1 (!%p353_p2), %v1745_v22 }
   0xd   : > { %s2167_s21 = smov (!%p403_p3, %s1473_s21), 31 }
   0xe   : > { %s1850_s26 = sshll.u32 %s2167_s21, 3  ;;  %1748 = vmatpush3.bf16.msra.mxu1 %v1745_v22 }
   0xf   : > { %s1856_s29 = scalar_lea.vmem %s2155_s1, %s1850_s26  ;;  %s1982_s12 = scalar_lea.vmem %s2154_s0, %s1850_s26 }
  0x10   : > { %v1859_v4 = vld [vmem:[%s1856_s29] sm:$0xff]  ;;  %v1862_v5 = vld [vmem:[%s1856_s29 + $0x8] sm:$0xff]  ;;  %v1865_v6 = vld [vmem:[%s1856_s29 + $0x10] sm:$0xff]  ;;  %s1996_s18 = scalar_lea.vmem %s2164_s10, %s1850_s26  ;;  %s2101_s25 = scalar_lea.vmem %s2165_s11, %s1850_s26 }
  0x11   : > { %1627 = vmatprep.mubr.msk.f32.mxu0 %vm466_vm0, %v1859_v4  ;;  %v1874_v7 = vld [vmem:[%s1856_s29 + $0x18] sm:$0xff]  ;;  %v1877_v8 = vld [vmem:[%s1856_s29 + $0x20] sm:$0xff]  ;;  %v1884_v9 = vld [vmem:[%s1856_s29 + $0x28] sm:$0xff] }
  0x12   : > { %1628 = vmatmul.mubr.msk.f32.vlgmr.msra.gmra.mrb[0].mxu0 %vm466_vm0, %v1862_v5  ;;  %v1887_v10 = vld [vmem:[%s1856_s29 + $0x30] sm:$0xff]  ;;  %v1894_v11 = vld [vmem:[%s1856_s29 + $0x38] sm:$0xff]  ;;  %v1897_v12 = vld [vmem:[%s1856_s29 + $0x40] sm:$0xff] }
  0x13   : > { %1630 = vmatprep.mubr.msk.f32.mxu0 %vm466_vm0, %v1865_v6  ;;  %v1904_v13 = vld [vmem:[%s1856_s29 + $0x48] sm:$0xff]  ;;  %v1907_v14 = vld [vmem:[%s1856_s29 + $0x50] sm:$0xff]  ;;  %v1914_v15 = vld [vmem:[%s1856_s29 + $0x58] sm:$0xff]  ;;  %1684 = vmatpush3.msra.mxu0 %v897_v23 }
  0x14   : > { %v1917_v16 = vld [vmem:[%s1856_s29 + $0x60] sm:$0xff]  ;;  %v1924_v17 = vld [vmem:[%s1856_s29 + $0x68] sm:$0xff]  ;;  %v1927_v18 = vld [vmem:[%s1856_s29 + $0x70] sm:$0xff] }
  0x15   : > { %v1934_v19 = vld [vmem:[%s1856_s29 + $0x78] sm:$0xff] }
  0x16   : > { %1631 = vmatmul.mubr.msk.f32.gmra.mrb[2].mxu0 %vm466_vm0, %v1874_v7 }
  0x17   : > { %1633 = vmatprep.mubr.msk.f32.mxu0 %vm466_vm0, %v1877_v8 }
  0x1a   : > { %1634 = vmatmul.mubr.msk.f32.gmra.mrb[4].mxu0 %vm466_vm0, %v1884_v9 }
  0x1b   : > { %1636 = vmatprep.mubr.msk.f32.mxu0 %vm466_vm0, %v1887_v10 }
  0x1e   : > { %1637 = vmatmul.mubr.msk.f32.gmra.mrb[6].mxu0 %vm466_vm0, %v1894_v11 }
  0x1f   : > { %1639 = vmatprep.mubr.msk.f32.mxu0 %vm466_vm0, %v1897_v12 }
  0x22   : > { %1640 = vmatmul.mubr.msk.f32.gmra.mrb[8].mxu0 %vm466_vm0, %v1904_v13 }
  0x23   : > { %1642 = vmatprep.mubr.msk.f32.mxu0 %vm466_vm0, %v1907_v14 }
  0x26   : > { %1643 = vmatmul.mubr.msk.f32.gmra.mrb[10].mxu0 %vm466_vm0, %v1914_v15 }
  0x27   : > { %1645 = vmatprep.mubr.msk.f32.mxu0 %vm466_vm0, %v1917_v16 }
  0x2a   : > { %1646 = vmatmul.mubr.msk.f32.gmra.mrb[12].mxu0 %vm466_vm0, %v1924_v17 }
  0x2b   : > { %1648 = vmatprep.mubr.msk.f32.mxu0 %vm466_vm0, %v1927_v18 }
  0x2e   : > { %1649 = vmatmul.mubr.msk.f32.gmra.mrb[14].mxu0 %vm466_vm0, %v1934_v19 }
  0xe5   : > { %v1629_v25 = vpop.f32.mrb[0].mxu0 }
  0xe6   : > { %v587_v26 = vadd.f32 %v1629_v25, %v1481_v24  ;;  %v581_v27 = vpop.f32.mrb[1].mxu0 }
  0xe7   : > { %v582_v28 = vadd.f32 %v1481_v24, %v581_v27  ;;  %v1115_v27 = vld [vmem:[%s2162_s8 + $0x8] sm:$0xff] }
  0xe8   : > { %v661_v31 = vmax.f32 %v587_v26, 0.0  ;;  %v1114_v26 = vld [vmem:[%s2162_s8] sm:$0xff] }
  0xe9   : > { %v660_v29 = vmax.f32 %v582_v28, 0.0  ;;  %v1632_v30 = vpop.f32.mrb[2].mxu0  ;;  %v1749_v28 = vpack.c.bf16 %v1115_v27, %v1114_v26 }
  0xea   : > { %v597_v32 = vadd.f32 %v1632_v30, %v1481_v24  ;;  %v591_v33 = vpop.f32.mrb[3].mxu0 }
  0xeb   : > { %v592_v34 = vadd.f32 %v1481_v24, %v591_v33  ;;  %1659 = vmatprep.mubr.msk.f32.mxu1 %vm687_vm1, %v660_v29  ;;  %v1117_v29 = vld [vmem:[%s2162_s8 + $0x18] sm:$0xff]  ;;  %1750 = vmatprep.subr.bf16.mxu1 %v1749_v28 }
  0xec   : > { %1660 = vmatmul.mubr.msk.f32.vlgmr.msra.gmra.mrb[0].mxu1 %vm687_vm1, %v661_v31  ;;  %v663_v37 = vmax.f32 %v597_v32, 0.0  ;;  %v1987_v31 = vld [vmem:[%s2159_s5] ss:$0 sm:$0xff]  ;;  %v427_v32 = vld [vmem:[%s1982_s12 + $0x8] sm:$0xff] }
  0xed   : > { %v662_v35 = vmax.f32 %v592_v34, 0.0  ;;  %v1635_v36 = vpop.f32.mrb[4].mxu0  ;;  %1752 = vmatpush3.bf16.msra.mxu1 %v1749_v28 }
  0xee   : > { %v607_v38 = vadd.f32 %v1635_v36, %v1481_v24  ;;  %v601_v39 = vpop.f32.mrb[5].mxu0 }
  0xef   : > { %v602_v40 = vadd.f32 %v1481_v24, %v601_v39  ;;  %1662 = vmatprep.mubr.msk.f32.mxu1 %vm687_vm1, %v662_v35  ;;  %v426_v35 = vld [vmem:[%s1982_s12] sm:$0xff] }
  0xf0   : > { %1663 = vmatmul.mubr.msk.f32.gmra.mrb[2].mxu1 %vm687_vm1, %v663_v37  ;;  %v665_v43 = vmax.f32 %v607_v38, 0.0 }
  0xf1   : > { %v664_v41 = vmax.f32 %v602_v40, 0.0  ;;  %v1638_v42 = vpop.f32.mrb[6].mxu0  ;;  %v429_v40 = vld [vmem:[%s1982_s12 + $0x18] sm:$0xff] }
  0xf2   : > { %v617_v44 = vadd.f32 %v1638_v42, %v1481_v24  ;;  %v611_v45 = vpop.f32.mrb[7].mxu0 }
  0xf3   : > { %v612_v46 = vadd.f32 %v1481_v24, %v611_v45  ;;  %1665 = vmatprep.mubr.msk.f32.mxu1 %vm687_vm1, %v664_v41 }
  0xf4   : > { %1666 = vmatmul.mubr.msk.f32.gmra.mrb[4].mxu1 %vm687_vm1, %v665_v43  ;;  %v667_v49 = vmax.f32 %v617_v44, 0.0  ;;  %v428_v43 = vld [vmem:[%s1982_s12 + $0x10] sm:$0xff] }
  0xf5   : > { %v666_v47 = vmax.f32 %v612_v46, 0.0  ;;  %v1641_v48 = vpop.f32.mrb[8].mxu0 }
  0xf6   : > { %v627_v50 = vadd.f32 %v1641_v48, %v1481_v24  ;;  %v621_v51 = vpop.f32.mrb[9].mxu0  ;;  %v431_v48 = vld [vmem:[%s1982_s12 + $0x28] sm:$0xff] }
  0xf7   : > { %v622_v52 = vadd.f32 %v1481_v24, %v621_v51  ;;  %1668 = vmatprep.mubr.msk.f32.mxu1 %vm687_vm1, %v666_v47  ;;  %v430_v51 = vld [vmem:[%s1982_s12 + $0x20] sm:$0xff] }
  0xf8   : > { %1669 = vmatmul.mubr.msk.f32.gmra.mrb[6].mxu1 %vm687_vm1, %v667_v49  ;;  %v669_v55 = vmax.f32 %v627_v50, 0.0 }
  0xf9   : > { %v668_v53 = vmax.f32 %v622_v52, 0.0  ;;  %v1644_v54 = vpop.f32.mrb[10].mxu0 }
  0xfa   : > { %v637_v56 = vadd.f32 %v1644_v54, %v1481_v24  ;;  %v631_v57 = vpop.f32.mrb[11].mxu0 }
  0xfb   : > { %v632_v58 = vadd.f32 %v1481_v24, %v631_v57  ;;  %1671 = vmatprep.mubr.msk.f32.mxu1 %vm687_vm1, %v668_v53 }
  0xfc   : > { %1672 = vmatmul.mubr.msk.f32.gmra.mrb[8].mxu1 %vm687_vm1, %v669_v55  ;;  %v671_v61 = vmax.f32 %v637_v56, 0.0  ;;  %v433_v56 = vld [vmem:[%s1982_s12 + $0x38] sm:$0xff] }
  0xfd   : > { %v670_v59 = vmax.f32 %v632_v58, 0.0  ;;  %v1647_v60 = vpop.f32.mrb[12].mxu0 }
  0xfe   : > { %v647_v62 = vadd.f32 %v1647_v60, %v1481_v24  ;;  %v641_v63 = vpop.f32.mrb[13].mxu0 }
  0xff   : > { %v642_v0 = vadd.f32 %v1481_v24, %v641_v63  ;;  %1674 = vmatprep.mubr.msk.f32.mxu1 %vm687_vm1, %v670_v59  ;;  %v432_v59 = vld [vmem:[%s1982_s12 + $0x30] sm:$0xff] }
 0x100   : > { %1675 = vmatmul.mubr.msk.f32.gmra.mrb[10].mxu1 %vm687_vm1, %v671_v61  ;;  %v673_v3 = vmax.f32 %v647_v62, 0.0 }
 0x101   : > { %v672_v1 = vmax.f32 %v642_v0, 0.0  ;;  %v1650_v2 = vpop.f32.mrb[14].mxu0  ;;  %v435_v0 = vld [vmem:[%s1982_s12 + $0x48] sm:$0xff] }
 0x102   : > { %v657_v20 = vadd.f32 %v1650_v2, %v1481_v24  ;;  %v651_v21 = vpop.f32.mrb[15].mxu0 }
 0x103   : > { %v652_v22 = vadd.f32 %v1481_v24, %v651_v21  ;;  %1677 = vmatprep.mubr.msk.f32.mxu1 %vm687_vm1, %v672_v1  ;;  %v1116_v24 = vld [vmem:[%s2162_s8 + $0x10] sm:$0xff] }
 0x104   : > { %1678 = vmatmul.mubr.msk.f32.gmra.mrb[12].mxu1 %vm687_vm1, %v673_v3  ;;  %v675_v25 = vmax.f32 %v657_v20, 0.0  ;;  %v1753_v30 = vpack.c.bf16 %v1117_v29, %v1116_v24  ;;  %v434_v3 = vld [vmem:[%s1982_s12 + $0x40] sm:$0xff]  ;;  %v436_v24 = vld [vmem:[%s1982_s12 + $0x50] sm:$0xff] }
 0x105   : > { %v674_v23 = vmax.f32 %v652_v22, 0.0 }
 0x106   : > { %1754 = vmatprep.subr.bf16.mxu1 %v1753_v30 }
 0x107   : > { %1680 = vmatprep.mubr.msk.f32.mxu1 %vm687_vm1, %v674_v23  ;;  %1756 = vmatpush3.bf16.msra.mxu1 %v1753_v30 }
 0x108   : > { %1681 = vmatmul.mubr.msk.f32.gmra.mrb[14].mxu1 %vm687_vm1, %v675_v25  ;;  %v437_v25 = vld [vmem:[%s1982_s12 + $0x58] sm:$0xff] }
 0x1bf   : > { %v1661_v33 = vpop.f32.mrb[0].mxu1 }
 0x1c0   : > { %v808_v34 = vadd.f32 %v1661_v33, %v1987_v31  ;;  %v802_v36 = vpop.f32.mrb[1].mxu1  ;;  %v439_v33 = vld [vmem:[%s1982_s12 + $0x68] sm:$0xff] }
 0x1c1   : > { %v803_v37 = vadd.f32 %v1987_v31, %v802_v36  ;;  %v438_v36 = vld [vmem:[%s1982_s12 + $0x60] sm:$0xff] }
 0x1c2   : > { %v882_v38 = vadd.f32 %v808_v34, %v427_v32 }
 0x1c3   : > { %v881_v39 = vadd.f32 %v803_v37, %v426_v35  ;;  %v1664_v41 = vpop.f32.mrb[2].mxu1 }
 0x1c4   : > { %1335 = vst.msk [vmem:[%s1996_s18 + $0x8] sm:$0xff] %vm466_vm0, %v882_v38  ;;  %v818_v42 = vadd.f32 %v1664_v41, %v1987_v31  ;;  %v812_v44 = vpop.f32.mrb[3].mxu1  ;;  %v441_v41 = vld [vmem:[%s1982_s12 + $0x78] sm:$0xff] }
 0x1c5   : > { %1334 = vst.msk [vmem:[%s1996_s18] sm:$0xff] %vm466_vm0, %v881_v39  ;;  %v813_v45 = vadd.f32 %v1987_v31, %v812_v44  ;;  %1685 = vmatprep.mubr.msk.f32.mxu0 %vm466_vm0, %v881_v39  ;;  %v440_v44 = vld [vmem:[%s1982_s12 + $0x70] sm:$0xff] }
 0x1c6   : > { %v884_v46 = vadd.f32 %v818_v42, %v429_v40  ;;  %1686 = vmatmul.mubr.msk.f32.vlgmr.msra.gmra.mrb[16].mxu0 %vm466_vm0, %v882_v38 }
 0x1c7   : > { %v883_v47 = vadd.f32 %v813_v45, %v428_v43  ;;  %v1667_v49 = vpop.f32.mrb[4].mxu1 }
 0x1c8   : > { %1337 = vst.msk [vmem:[%s1996_s18 + $0x18] sm:$0xff] %vm466_vm0, %v884_v46  ;;  %v828_v50 = vadd.f32 %v1667_v49, %v1987_v31  ;;  %v822_v52 = vpop.f32.mrb[5].mxu1  ;;  %v1515_v49 = vld [vmem:[%s2161_s7] ss:$0 sm:$0xff] }
 0x1c9   : > { %1336 = vst.msk [vmem:[%s1996_s18 + $0x10] sm:$0xff] %vm466_vm0, %v883_v47  ;;  %v823_v53 = vadd.f32 %v1987_v31, %v822_v52  ;;  %1688 = vmatprep.mubr.msk.f32.mxu0 %vm466_vm0, %v883_v47 }
 0x1ca   : > { %v886_v54 = vadd.f32 %v828_v50, %v431_v48  ;;  %1689 = vmatmul.mubr.msk.f32.gmra.mrb[18].mxu0 %vm466_vm0, %v884_v46 }
 0x1cb   : > { %v885_v55 = vadd.f32 %v823_v53, %v430_v51  ;;  %v1670_v57 = vpop.f32.mrb[6].mxu1 }
 0x1cc   : > { %1339 = vst.msk [vmem:[%s1996_s18 + $0x28] sm:$0xff] %vm466_vm0, %v886_v54  ;;  %v838_v58 = vadd.f32 %v1670_v57, %v1987_v31  ;;  %v832_v60 = vpop.f32.mrb[7].mxu1 }
 0x1cd   : > { %1338 = vst.msk [vmem:[%s1996_s18 + $0x20] sm:$0xff] %vm466_vm0, %v885_v55  ;;  %v833_v61 = vadd.f32 %v1987_v31, %v832_v60  ;;  %1691 = vmatprep.mubr.msk.f32.mxu0 %vm466_vm0, %v885_v55 }
 0x1ce   : > { %v888_v62 = vadd.f32 %v838_v58, %v433_v56  ;;  %1692 = vmatmul.mubr.msk.f32.gmra.mrb[20].mxu0 %vm466_vm0, %v886_v54 }
 0x1cf   : > { %v887_v63 = vadd.f32 %v833_v61, %v432_v59  ;;  %v1673_v1 = vpop.f32.mrb[8].mxu1 }
 0x1d0   : > { %1341 = vst.msk [vmem:[%s1996_s18 + $0x38] sm:$0xff] %vm466_vm0, %v888_v62  ;;  %v848_v2 = vadd.f32 %v1673_v1, %v1987_v31  ;;  %v842_v20 = vpop.f32.mrb[9].mxu1 }
 0x1d1   : > { %1340 = vst.msk [vmem:[%s1996_s18 + $0x30] sm:$0xff] %vm466_vm0, %v887_v63  ;;  %v843_v21 = vadd.f32 %v1987_v31, %v842_v20  ;;  %1694 = vmatprep.mubr.msk.f32.mxu0 %vm466_vm0, %v887_v63 }
 0x1d2   : > { %v890_v22 = vadd.f32 %v848_v2, %v435_v0  ;;  %1695 = vmatmul.mubr.msk.f32.gmra.mrb[22].mxu0 %vm466_vm0, %v888_v62 }
 0x1d3   : > { %v889_v23 = vadd.f32 %v843_v21, %v434_v3  ;;  %v1676_v26 = vpop.f32.mrb[10].mxu1 }
 0x1d4   : > { %1343 = vst.msk [vmem:[%s1996_s18 + $0x48] sm:$0xff] %vm466_vm0, %v890_v22  ;;  %v858_v27 = vadd.f32 %v1676_v26, %v1987_v31  ;;  %v852_v28 = vpop.f32.mrb[11].mxu1 }
 0x1d5   : > { %1342 = vst.msk [vmem:[%s1996_s18 + $0x40] sm:$0xff] %vm466_vm0, %v889_v23  ;;  %v853_v29 = vadd.f32 %v1987_v31, %v852_v28  ;;  %1697 = vmatprep.mubr.msk.f32.mxu0 %vm466_vm0, %v889_v23 }
 0x1d6   : > { %v892_v30 = vadd.f32 %v858_v27, %v437_v25  ;;  %1698 = vmatmul.mubr.msk.f32.gmra.mrb[24].mxu0 %vm466_vm0, %v890_v22 }
 0x1d7   : > { %v891_v32 = vadd.f32 %v853_v29, %v436_v24  ;;  %v1679_v34 = vpop.f32.mrb[12].mxu1 }
 0x1d8   : > { %1345 = vst.msk [vmem:[%s1996_s18 + $0x58] sm:$0xff] %vm466_vm0, %v892_v30  ;;  %v868_v35 = vadd.f32 %v1679_v34, %v1987_v31  ;;  %v862_v37 = vpop.f32.mrb[13].mxu1 }
 0x1d9   : > { %1344 = vst.msk [vmem:[%s1996_s18 + $0x50] sm:$0xff] %vm466_vm0, %v891_v32  ;;  %v863_v38 = vadd.f32 %v1987_v31, %v862_v37  ;;  %1700 = vmatprep.mubr.msk.f32.mxu0 %vm466_vm0, %v891_v32 }
 0x1da   : > { %v894_v39 = vadd.f32 %v868_v35, %v439_v33  ;;  %1701 = vmatmul.mubr.msk.f32.gmra.mrb[26].mxu0 %vm466_vm0, %v892_v30 }
 0x1db   : > { %v893_v40 = vadd.f32 %v863_v38, %v438_v36  ;;  %v1682_v42 = vpop.f32.mrb[14].mxu1 }
 0x1dc   : > { %1347 = vst.msk [vmem:[%s1996_s18 + $0x68] sm:$0xff] %vm466_vm0, %v894_v39  ;;  %v878_v43 = vadd.f32 %v1682_v42, %v1987_v31  ;;  %v872_v45 = vpop.f32.mrb[15].mxu1 }
 0x1dd   : > { %1346 = vst.msk [vmem:[%s1996_s18 + $0x60] sm:$0xff] %vm466_vm0, %v893_v40  ;;  %v873_v46 = vadd.f32 %v1987_v31, %v872_v45  ;;  %1703 = vmatprep.mubr.msk.f32.mxu0 %vm466_vm0, %v893_v40 }
 0x1de   : > { %v896_v47 = vadd.f32 %v878_v43, %v441_v41  ;;  %1704 = vmatmul.mubr.msk.f32.gmra.mrb[28].mxu0 %vm466_vm0, %v894_v39 }
 0x1df   : > { %v895_v48 = vadd.f32 %v873_v46, %v440_v44 }
 0x1e0   : > { %1349 = vst.msk [vmem:[%s1996_s18 + $0x78] sm:$0xff] %vm466_vm0, %v896_v47 }
 0x1e1   : > { %1348 = vst.msk [vmem:[%s1996_s18 + $0x70] sm:$0xff] %vm466_vm0, %v895_v48  ;;  %1706 = vmatprep.mubr.msk.f32.mxu0 %vm466_vm0, %v895_v48 }
 0x1e2   : > { %1707 = vmatmul.mubr.msk.f32.gmra.mrb[30].mxu0 %vm466_vm0, %v896_v47 }
 0x299   : > { %v1687_v50 = vpop.f32.mrb[16].mxu0 }
 0x29a   : > { %v1025_v31 = vadd.f32 %v1687_v50, %v1515_v49  ;;  %v1019_v51 = vpop.f32.mrb[17].mxu0 }
 0x29b   : > { %v1020_v52 = vadd.f32 %v1515_v49, %v1019_v51 }
 0x29c   : > { %v1099_v55 = vmax.f32 %v1025_v31, 0.0  ;;  %v1532_v31 = vld [vmem:[%s2163_s9] ss:$0 sm:$0xff] }
 0x29d   : > { %v1098_v53 = vmax.f32 %v1020_v52, 0.0  ;;  %v1690_v54 = vpop.f32.mrb[18].mxu0 }
 0x29e   : > { %v1035_v56 = vadd.f32 %v1690_v54, %v1515_v49  ;;  %v1029_v57 = vpop.f32.mrb[19].mxu0 }
 0x29f   : > { %v1030_v58 = vadd.f32 %v1515_v49, %v1029_v57  ;;  %1717 = vmatprep.mubr.msk.f32.mxu1 %vm687_vm1, %v1098_v53 }
 0x2a0   : > { %1718 = vmatmul.mubr.msk.f32.vlgmr.msra.gmra.mrb[16].mxu1 %vm687_vm1, %v1099_v55  ;;  %v1101_v61 = vmax.f32 %v1035_v56, 0.0 }
 0x2a1   : > { %v1100_v59 = vmax.f32 %v1030_v58, 0.0  ;;  %v1693_v60 = vpop.f32.mrb[20].mxu0 }
 0x2a2   : > { %v1045_v62 = vadd.f32 %v1693_v60, %v1515_v49  ;;  %v1039_v63 = vpop.f32.mrb[21].mxu0 }
 0x2a3   : > { %v1040_v0 = vadd.f32 %v1515_v49, %v1039_v63  ;;  %1720 = vmatprep.mubr.msk.f32.mxu1 %vm687_vm1, %v1100_v59 }
 0x2a4   : > { %1721 = vmatmul.mubr.msk.f32.gmra.mrb[18].mxu1 %vm687_vm1, %v1101_v61  ;;  %v1103_v3 = vmax.f32 %v1045_v62, 0.0 }
 0x2a5   : > { %v1102_v1 = vmax.f32 %v1040_v0, 0.0  ;;  %v1696_v2 = vpop.f32.mrb[22].mxu0 }
 0x2a6   : > { %v1055_v20 = vadd.f32 %v1696_v2, %v1515_v49  ;;  %v1049_v21 = vpop.f32.mrb[23].mxu0 }
 0x2a7   : > { %v1050_v22 = vadd.f32 %v1515_v49, %v1049_v21  ;;  %1723 = vmatprep.mubr.msk.f32.mxu1 %vm687_vm1, %v1102_v1 }
 0x2a8   : > { %1724 = vmatmul.mubr.msk.f32.gmra.mrb[20].mxu1 %vm687_vm1, %v1103_v3  ;;  %v1105_v26 = vmax.f32 %v1055_v20, 0.0 }
 0x2a9   : > { %v1104_v23 = vmax.f32 %v1050_v22, 0.0  ;;  %v1699_v25 = vpop.f32.mrb[24].mxu0 }
 0x2aa   : > { %v1065_v27 = vadd.f32 %v1699_v25, %v1515_v49  ;;  %v1059_v24 = vpop.f32.mrb[25].mxu0 }
 0x2ab   : > { %v1060_v28 = vadd.f32 %v1515_v49, %v1059_v24  ;;  %1726 = vmatprep.mubr.msk.f32.mxu1 %vm687_vm1, %v1104_v23 }
 0x2ac   : > { %1727 = vmatmul.mubr.msk.f32.gmra.mrb[22].mxu1 %vm687_vm1, %v1105_v26  ;;  %v1107_v32 = vmax.f32 %v1065_v27, 0.0 }
 0x2ad   : > { %v1106_v29 = vmax.f32 %v1060_v28, 0.0  ;;  %v1702_v30 = vpop.f32.mrb[26].mxu0 }
 0x2ae   : > { %v1075_v33 = vadd.f32 %v1702_v30, %v1515_v49  ;;  %v1069_v34 = vpop.f32.mrb[27].mxu0 }
 0x2af   : > { %v1070_v35 = vadd.f32 %v1515_v49, %v1069_v34  ;;  %1729 = vmatprep.mubr.msk.f32.mxu1 %vm687_vm1, %v1106_v29 }
 0x2b0   : > { %1730 = vmatmul.mubr.msk.f32.gmra.mrb[24].mxu1 %vm687_vm1, %v1107_v32  ;;  %v1109_v38 = vmax.f32 %v1075_v33, 0.0 }
 0x2b1   : > { %v1108_v36 = vmax.f32 %v1070_v35, 0.0  ;;  %v1705_v37 = vpop.f32.mrb[28].mxu0 }
 0x2b2   : > { %v1085_v39 = vadd.f32 %v1705_v37, %v1515_v49  ;;  %v1079_v40 = vpop.f32.mrb[29].mxu0 }
 0x2b3   : > { %v1080_v41 = vadd.f32 %v1515_v49, %v1079_v40  ;;  %1732 = vmatprep.mubr.msk.f32.mxu1 %vm687_vm1, %v1108_v36 }
 0x2b4   : > { %1733 = vmatmul.mubr.msk.f32.gmra.mrb[26].mxu1 %vm687_vm1, %v1109_v38  ;;  %v1111_v44 = vmax.f32 %v1085_v39, 0.0 }
 0x2b5   : > { %v1110_v42 = vmax.f32 %v1080_v41, 0.0  ;;  %v1708_v43 = vpop.f32.mrb[30].mxu0 }
 0x2b6   : > { %v1095_v45 = vadd.f32 %v1708_v43, %v1515_v49  ;;  %v1089_v46 = vpop.f32.mrb[31].mxu0 }
 0x2b7   : > { %v1090_v47 = vadd.f32 %v1515_v49, %v1089_v46  ;;  %1735 = vmatprep.mubr.msk.f32.mxu1 %vm687_vm1, %v1110_v42 }
 0x2b8   : > { %1736 = vmatmul.mubr.msk.f32.gmra.mrb[28].mxu1 %vm687_vm1, %v1111_v44  ;;  %v1113_v50 = vmax.f32 %v1095_v45, 0.0 }
 0x2b9   : > { %v1112_v48 = vmax.f32 %v1090_v47, 0.0 }
 0x2bb   : > { %1738 = vmatprep.mubr.msk.f32.mxu1 %vm687_vm1, %v1112_v48 }
 0x2bc   : > { %1739 = vmatmul.mubr.msk.f32.gmra.mrb[30].mxu1 %vm687_vm1, %v1113_v50 }
 0x373   : > { %v1719_v51 = vpop.f32.mrb[16].mxu1 }
 0x374   : > { %v1245_v52 = vadd.f32 %v1719_v51, %v1532_v31  ;;  %v1239_v53 = vpop.f32.mrb[17].mxu1 }
 0x375   : > { %v1240_v49 = vadd.f32 %v1532_v31, %v1239_v53 }
 0x376   : > { %v1319_v54 = vadd.f32 %v1245_v52, %v1862_v5 }
 0x377   : > { %v1318_v55 = vadd.f32 %v1240_v49, %v1859_v4  ;;  %v1722_v56 = vpop.f32.mrb[18].mxu1 }
 0x378   : > { %1351 = vst.msk [vmem:[%s2101_s25 + $0x8] sm:$0xff] %vm466_vm0, %v1319_v54  ;;  %v1255_v57 = vadd.f32 %v1722_v56, %v1532_v31  ;;  %v1249_v58 = vpop.f32.mrb[19].mxu1 }
 0x379   : > { %1350 = vst.msk [vmem:[%s2101_s25] sm:$0xff] %vm466_vm0, %v1318_v55  ;;  %v1250_v59 = vadd.f32 %v1532_v31, %v1249_v58 }
 0x37a   : > { %v1321_v60 = vadd.f32 %v1255_v57, %v1874_v7 }
 0x37b   : > { %v1320_v61 = vadd.f32 %v1250_v59, %v1865_v6  ;;  %v1725_v62 = vpop.f32.mrb[20].mxu1 }
 0x37c   : > { %1353 = vst.msk [vmem:[%s2101_s25 + $0x18] sm:$0xff] %vm466_vm0, %v1321_v60  ;;  %v1265_v5 = vadd.f32 %v1725_v62, %v1532_v31  ;;  %v1259_v4 = vpop.f32.mrb[21].mxu1 }
 0x37d   : > { %1352 = vst.msk [vmem:[%s2101_s25 + $0x10] sm:$0xff] %vm466_vm0, %v1320_v61  ;;  %v1260_v63 = vadd.f32 %v1532_v31, %v1259_v4 }
 0x37e   : > { %v1323_v0 = vadd.f32 %v1265_v5, %v1884_v9 }
 0x37f   : > { %v1322_v1 = vadd.f32 %v1260_v63, %v1877_v8  ;;  %v1728_v2 = vpop.f32.mrb[22].mxu1 }
 0x380   : > { %1355 = vst.msk [vmem:[%s2101_s25 + $0x28] sm:$0xff] %vm466_vm0, %v1323_v0  ;;  %v1275_v7 = vadd.f32 %v1728_v2, %v1532_v31  ;;  %v1269_v6 = vpop.f32.mrb[23].mxu1 }
 0x381   : > { %1354 = vst.msk [vmem:[%s2101_s25 + $0x20] sm:$0xff] %vm466_vm0, %v1322_v1  ;;  %v1270_v3 = vadd.f32 %v1532_v31, %v1269_v6 }
 0x382   : > { %v1325_v20 = vadd.f32 %v1275_v7, %v1894_v11 }
 0x383   : > { %v1324_v21 = vadd.f32 %v1270_v3, %v1887_v10  ;;  %v1731_v22 = vpop.f32.mrb[24].mxu1 }
 0x384   : > { %1357 = vst.msk [vmem:[%s2101_s25 + $0x38] sm:$0xff] %vm466_vm0, %v1325_v20  ;;  %v1285_v9 = vadd.f32 %v1731_v22, %v1532_v31  ;;  %v1279_v8 = vpop.f32.mrb[25].mxu1 }
 0x385   : > { %1356 = vst.msk [vmem:[%s2101_s25 + $0x30] sm:$0xff] %vm466_vm0, %v1324_v21  ;;  %v1280_v23 = vadd.f32 %v1532_v31, %v1279_v8 }
 0x386   : > { %v1327_v25 = vadd.f32 %v1285_v9, %v1904_v13 }
 0x387   : > { %v1326_v26 = vadd.f32 %v1280_v23, %v1897_v12  ;;  %v1734_v27 = vpop.f32.mrb[26].mxu1 }
 0x388   : > { %1359 = vst.msk [vmem:[%s2101_s25 + $0x48] sm:$0xff] %vm466_vm0, %v1327_v25  ;;  %v1295_v11 = vadd.f32 %v1734_v27, %v1532_v31  ;;  %v1289_v10 = vpop.f32.mrb[27].mxu1 }
 0x389   : > { %1358 = vst.msk [vmem:[%s2101_s25 + $0x40] sm:$0xff] %vm466_vm0, %v1326_v26  ;;  %v1290_v24 = vadd.f32 %v1532_v31, %v1289_v10 }
 0x38a   : > { %v1329_v28 = vadd.f32 %v1295_v11, %v1914_v15 }
 0x38b   : > { %v1328_v29 = vadd.f32 %v1290_v24, %v1907_v14  ;;  %v1737_v30 = vpop.f32.mrb[28].mxu1 }
 0x38c   : > { %1361 = vst.msk [vmem:[%s2101_s25 + $0x58] sm:$0xff] %vm466_vm0, %v1329_v28  ;;  %v1305_v12 = vadd.f32 %v1737_v30, %v1532_v31  ;;  %v1299_v13 = vpop.f32.mrb[29].mxu1 }
 0x38d   : > { %1360 = vst.msk [vmem:[%s2101_s25 + $0x50] sm:$0xff] %vm466_vm0, %v1328_v29  ;;  %v1300_v32 = vadd.f32 %v1532_v31, %v1299_v13 }
 0x38e   : > { %v1331_v33 = vadd.f32 %v1305_v12, %v1924_v17 }
 0x38f   : > { %v1330_v34 = vadd.f32 %v1300_v32, %v1917_v16  ;;  %v1740_v35 = vpop.f32.mrb[30].mxu1 }
 0x390   : > { %1363 = vst.msk [vmem:[%s2101_s25 + $0x68] sm:$0xff] %vm466_vm0, %v1331_v33  ;;  %v1315_v15 = vadd.f32 %v1740_v35, %v1532_v31  ;;  %v1309_v36 = vpop.f32.mrb[31].mxu1 }
 0x391   : > { %1362 = vst.msk [vmem:[%s2101_s25 + $0x60] sm:$0xff] %vm466_vm0, %v1330_v34  ;;  %v1310_v14 = vadd.f32 %v1532_v31, %v1309_v36 }
 0x392   : > { %v1333_v37 = vadd.f32 %v1315_v15, %v1934_v19 }
 0x393   : > { %v1332_v38 = vadd.f32 %v1310_v14, %v1927_v18 }
 0x394   : > { %1365 = vst.msk [vmem:[%s2101_s25 + $0x78] sm:$0xff] %vm466_vm0, %v1333_v37 }
 0x395   : > { %1364 = vst.msk [vmem:[%s2101_s25 + $0x70] sm:$0xff] %vm466_vm0, %v1332_v38 }
 0x396 PF: > { %s22_s17 = sadd.s32 1, %s1771_s17  }
 0x397   : > { %p19_p4 = scmp.ge.s32.totalorder %s22_s17, 4  }
 0x399   :  { %21 = sbr.rel (!%p19_p4) target bundleno = 1 (0x1), region = 105 }

</bundles_post_ra>
